<compile_context>
chip_gen: v7x
topology: tpu7x:2x2x1
jax: 0.10.0
libtpu: 0.0.40
codegen_flags: <defaults>
</compile_context>

<pallas_src>
import functools

import jax
import jax.numpy as jnp
from jax.experimental import pallas as pl
from jax.experimental.pallas import tpu as pltpu


H1 = 200
H2 = 150
LANE = 128


def _round_up(x, m):
    return ((x + m - 1) // m) * m


def actor_kernel(x_ref, w1_ref, b1_ref, w2_ref, b2_ref, w3_ref, b3_ref, out_ref):
    # x tile: [TB, S] f32 -> bf16 for the MXU; accumulate in f32.
    x = x_ref[...].astype(jnp.bfloat16)
    h1 = jnp.dot(x, w1_ref[...], preferred_element_type=jnp.float32) + b1_ref[...]
    h1 = jnp.maximum(h1, 0.0)                                   # relu (f32, VPU)
    h2 = jnp.dot(h1.astype(jnp.bfloat16), w2_ref[...],
                 preferred_element_type=jnp.float32) + b2_ref[...]
    h2 = jnp.maximum(h2, 0.0)                                   # relu
    y = jnp.dot(h2.astype(jnp.bfloat16), w3_ref[...],
                preferred_element_type=jnp.float32) + b3_ref[...]
    out_ref[...] = jnp.tanh(y)                                  # tanh (EUP), lane-dense store


def prepare_actor_params(params):
    """One-time prep: cast weights to bf16, zero-pad output dim to 128 lanes.

    Padded w3/b3 columns are exact zeros so tanh(0)=0 in padded lanes; the
    wrapper slices them away.
    """
    action_size = params["w3"].shape[1]
    a_pad = _round_up(max(action_size, 1), LANE)
    w3p = jnp.zeros((H2, a_pad), jnp.bfloat16).at[:, :action_size].set(
        params["w3"].astype(jnp.bfloat16))
    b3p = jnp.zeros((1, a_pad), jnp.float32).at[:, :action_size].set(
        params["b3"].astype(jnp.float32))
    return {
        "w1": params["w1"].astype(jnp.bfloat16),
        "b1": params["b1"].astype(jnp.float32),
        "w2": params["w2"].astype(jnp.bfloat16),
        "b2": params["b2"].astype(jnp.float32),
        "w3p": w3p,
        "b3p": b3p,
        "action_size": action_size,
        "a_pad": a_pad,
    }


@functools.partial(jax.jit, static_argnames=("tb",))
def _actor_forward_padded(xp, w1, b1, w2, b2, w3p, b3p, tb):
    bp, s = xp.shape
    a_pad = w3p.shape[1]
    grid = (bp // tb,)
    return pl.pallas_call(
        actor_kernel,
        out_shape=jax.ShapeDtypeStruct((bp, a_pad), jnp.float32),
        grid=grid,
        in_specs=[
            pl.BlockSpec((tb, s), lambda i: (i, 0)),        # x: streamed per batch tile
            pl.BlockSpec((s, H1), lambda i: (0, 0)),        # weights/biases: VMEM-resident
            pl.BlockSpec((1, H1), lambda i: (0, 0)),
            pl.BlockSpec((H1, H2), lambda i: (0, 0)),
            pl.BlockSpec((1, H2), lambda i: (0, 0)),
            pl.BlockSpec((H2, a_pad), lambda i: (0, 0)),
            pl.BlockSpec((1, a_pad), lambda i: (0, 0)),
        ],
        out_specs=pl.BlockSpec((tb, a_pad), lambda i: (i, 0)),
        compiler_params=pltpu.CompilerParams(
            dimension_semantics=("parallel",),              # use both TCs on v7x
        ),
    )(xp, w1, b1, w2, b2, w3p, b3p)


def actor_forward(state, prep, *, tb=256):
    """state: [batch, state_size] f32; prep: output of prepare_actor_params."""
    batch = state.shape[0]
    action_size = prep["action_size"]
    # Batch tile: 256 is MXU-shaped for v6e/v7x (multiple of 128 for v5e);
    # shrink to the 8-rounded batch for tiny calls.
    tile = min(tb, _round_up(batch, 8))
    bp = _round_up(batch, tile)
    xp = state if bp == batch else jnp.pad(state, ((0, bp - batch), (0, 0)))
    out = _actor_forward_padded(xp, prep["w1"], prep["b1"], prep["w2"], prep["b2"],
                                prep["w3p"], prep["b3p"], tile)
    return out[:batch, :action_size]


def init_actor_params(key, state_size, action_size):
    """Deterministic init mirroring the module's reset_parameters() shapes.

    NOTE: PyTorch's hidden_init intentionally uses weight.size()[0]
    (== out_features, 200/150) as 'fan_in'; we reproduce that quirk so value
    ranges match the reference model. Do not "fix" it.
    """
    k1, k2, k3, kb1, kb2, kb3 = jax.random.split(key, 6)
    lim1 = 1.0 / jnp.sqrt(jnp.float32(H1))   # hidden_init(fc1): weight.size()[0] == 200
    lim2 = 1.0 / jnp.sqrt(jnp.float32(H2))   # hidden_init(fc2): weight.size()[0] == 150
    lim3 = 0.003
    # PyTorch default bias init: uniform(-1/sqrt(in_features), +1/sqrt(in_features))
    blim1 = 1.0 / jnp.sqrt(jnp.float32(state_size))
    blim2 = 1.0 / jnp.sqrt(jnp.float32(H1))
    blim3 = 1.0 / jnp.sqrt(jnp.float32(H2))
    params = {
        "w1": jax.random.uniform(k1, (state_size, H1), jnp.float32, -lim1, lim1),
        "b1": jax.random.uniform(kb1, (1, H1), jnp.float32, -blim1, blim1),
        "w2": jax.random.uniform(k2, (H1, H2), jnp.float32, -lim2, lim2),
        "b2": jax.random.uniform(kb2, (1, H2), jnp.float32, -blim2, blim2),
        "w3": jax.random.uniform(k3, (H2, action_size), jnp.float32, -lim3, lim3),
        "b3": jax.random.uniform(kb3, (1, action_size), jnp.float32, -blim3, blim3),
    }
    return params


def actor_forward_ref(state, params):
    h1 = jnp.maximum(state @ params["w1"] + params["b1"], 0.0)
    h2 = jnp.maximum(h1 @ params["w2"] + params["b2"], 0.0)
    return jnp.tanh(h2 @ params["w3"] + params["b3"])


if __name__ == "__main__":
    # Tennis env (p3_collab-compet): state_size=24, action_size=2
    state_size, action_size = 24, 2
    key = jax.random.PRNGKey(0)
    kp, kx1, kx2 = jax.random.split(key, 3)
    params = init_actor_params(kp, state_size, action_size)
    prep = prepare_actor_params(params)

    # Small per-env-step style batch.
    batch = 8
    state = jax.random.normal(kx1, (batch, state_size), jnp.float32)
    out = jax.block_until_ready(actor_forward(state, prep))
    ref = jax.block_until_ready(actor_forward_ref(state, params))
    assert out.shape == (batch, action_size)
    assert bool(jnp.all(jnp.abs(out) <= 1.0 + 1e-6))
    assert bool(jnp.allclose(out, ref, atol=1e-2, rtol=1e-2))

    # Replay-buffer style batch (exercises the batch grid + non-divisible tail).
    batch2 = 300
    state2 = jax.random.normal(kx2, (batch2, state_size), jnp.float32)
    out2 = jax.block_until_ready(actor_forward(state2, prep))
    ref2 = jax.block_until_ready(actor_forward_ref(state2, params))
    assert out2.shape == (batch2, action_size)
    assert bool(jnp.allclose(out2, ref2, atol=1e-2, rtol=1e-2))

    print("KERNEL_OK")
</pallas_src>

<mosaic_0001>
module attributes {stable_mosaic.version = 11 : i64} {
  func.func @actor_kernel(%arg0: i32, %arg1: memref<8x24xf32, #tpu.memory_space<vmem>>, %arg2: memref<24x200xbf16, #tpu.memory_space<vmem>>, %arg3: memref<1x200xf32, #tpu.memory_space<vmem>>, %arg4: memref<200x150xbf16, #tpu.memory_space<vmem>>, %arg5: memref<1x150xf32, #tpu.memory_space<vmem>>, %arg6: memref<150x128xbf16, #tpu.memory_space<vmem>>, %arg7: memref<1x128xf32, #tpu.memory_space<vmem>>, %arg8: memref<8x128xf32, #tpu.memory_space<vmem>>) attributes {dimension_semantics = [#tpu.dimension_semantics<parallel>], iteration_bounds = array<i64: 1>, scalar_prefetch = 0 : i64, scratch_operands = 0 : i64, tpu.core_type = #tpu.core_type<tc>, window_params = [{transform_indices = @transform_0, window_bounds = array<i64: 8, 24>}, {pipeline_mode = #tpu.pipeline_mode<synchronous>, transform_indices = @transform_1, window_bounds = array<i64: 24, 200>}, {pipeline_mode = #tpu.pipeline_mode<synchronous>, transform_indices = @transform_2, window_bounds = array<i64: 1, 200>}, {pipeline_mode = #tpu.pipeline_mode<synchronous>, transform_indices = @transform_3, window_bounds = array<i64: 200, 150>}, {pipeline_mode = #tpu.pipeline_mode<synchronous>, transform_indices = @transform_4, window_bounds = array<i64: 1, 150>}, {pipeline_mode = #tpu.pipeline_mode<synchronous>, transform_indices = @transform_5, window_bounds = array<i64: 150, 128>}, {pipeline_mode = #tpu.pipeline_mode<synchronous>, transform_indices = @transform_6, window_bounds = array<i64: 1, 128>}, {transform_indices = @transform_7, window_bounds = array<i64: 8, 128>}]} {
    %c0 = arith.constant 0 : index
    %c0_0 = arith.constant 0 : index
    %0 = vector.load %arg1[%c0, %c0_0] : memref<8x24xf32, #tpu.memory_space<vmem>>, vector<8x24xf32>
    %1 = arith.truncf %0 : vector<8x24xf32> to vector<8x24xbf16>
    %c0_1 = arith.constant 0 : index
    %c0_2 = arith.constant 0 : index
    %2 = vector.load %arg2[%c0_1, %c0_2] : memref<24x200xbf16, #tpu.memory_space<vmem>>, vector<24x200xbf16>
    %cst = arith.constant dense<0.000000e+00> : vector<8x200xf32>
    %3 = tpu.matmul %1, %2, %cst {dimension_numbers = #tpu.dot_dimension_numbers<[1], [0], [0], [1], [0, 0, 1, 1], [], []>} : vector<8x24xbf16>, vector<24x200xbf16>, vector<8x200xf32> -> vector<8x200xf32>
    %c0_3 = arith.constant 0 : index
    %c0_4 = arith.constant 0 : index
    %4 = vector.load %arg3[%c0_3, %c0_4] : memref<1x200xf32, #tpu.memory_space<vmem>>, vector<1x200xf32>
    %5 = vector.broadcast %4 : vector<1x200xf32> to vector<8x200xf32>
    %6 = arith.addf %3, %5 : vector<8x200xf32>
    %cst_5 = arith.constant 0.000000e+00 : f32
    %7 = vector.broadcast %cst_5 : f32 to vector<8x200xf32>
    %8 = arith.maximumf %6, %7 : vector<8x200xf32>
    %9 = arith.truncf %8 : vector<8x200xf32> to vector<8x200xbf16>
    %c0_6 = arith.constant 0 : index
    %c0_7 = arith.constant 0 : index
    %10 = vector.load %arg4[%c0_6, %c0_7] : memref<200x150xbf16, #tpu.memory_space<vmem>>, vector<200x150xbf16>
    %cst_8 = arith.constant dense<0.000000e+00> : vector<8x150xf32>
    %11 = tpu.matmul %9, %10, %cst_8 {dimension_numbers = #tpu.dot_dimension_numbers<[1], [0], [0], [1], [0, 0, 1, 1], [], []>} : vector<8x200xbf16>, vector<200x150xbf16>, vector<8x150xf32> -> vector<8x150xf32>
    %c0_9 = arith.constant 0 : index
    %c0_10 = arith.constant 0 : index
    %12 = vector.load %arg5[%c0_9, %c0_10] : memref<1x150xf32, #tpu.memory_space<vmem>>, vector<1x150xf32>
    %13 = vector.broadcast %12 : vector<1x150xf32> to vector<8x150xf32>
    %14 = arith.addf %11, %13 : vector<8x150xf32>
    %cst_11 = arith.constant 0.000000e+00 : f32
    %15 = vector.broadcast %cst_11 : f32 to vector<8x150xf32>
    %16 = arith.maximumf %14, %15 : vector<8x150xf32>
    %17 = arith.truncf %16 : vector<8x150xf32> to vector<8x150xbf16>
    %c0_12 = arith.constant 0 : index
    %c0_13 = arith.constant 0 : index
    %18 = vector.load %arg6[%c0_12, %c0_13] : memref<150x128xbf16, #tpu.memory_space<vmem>>, vector<150x128xbf16>
    %cst_14 = arith.constant dense<0.000000e+00> : vector<8x128xf32>
    %19 = tpu.matmul %17, %18, %cst_14 {dimension_numbers = #tpu.dot_dimension_numbers<[1], [0], [0], [1], [0, 0, 1, 1], [], []>} : vector<8x150xbf16>, vector<150x128xbf16>, vector<8x128xf32> -> vector<8x128xf32>
    %c0_15 = arith.constant 0 : index
    %c0_16 = arith.constant 0 : index
    %20 = vector.load %arg7[%c0_15, %c0_16] : memref<1x128xf32, #tpu.memory_space<vmem>>, vector<1x128xf32>
    %21 = vector.broadcast %20 : vector<1x128xf32> to vector<8x128xf32>
    %22 = arith.addf %19, %21 : vector<8x128xf32>
    %23 = math.tanh %22 : vector<8x128xf32>
    %c0_17 = arith.constant 0 : index
    %c0_18 = arith.constant 0 : index
    %24 = vector.load %arg8[%c0_17, %c0_18] : memref<8x128xf32, #tpu.memory_space<vmem>>, vector<8x128xf32>
    tpu.vector_store %arg8[%c0_17, %c0_18], %23 {strides = array<i32>} : memref<8x128xf32, #tpu.memory_space<vmem>>, vector<8x128xf32>,
    return
  }
  func.func @transform_0(%arg0: i32) -> (i32, i32) {
    %c0_i32 = arith.constant 0 : i32
    %c0_i32_0 = arith.constant 0 : i32
    return %arg0, %c0_i32 : i32, i32
  }
  func.func @transform_1(%arg0: i32) -> (i32, i32) {
    %c0_i32 = arith.constant 0 : i32
    %c0_i32_0 = arith.constant 0 : i32
    %c0_i32_1 = arith.constant 0 : i32
    return %c0_i32, %c0_i32_0 : i32, i32
  }
  func.func @transform_2(%arg0: i32) -> (i32, i32) {
    %c0_i32 = arith.constant 0 : i32
    %c0_i32_0 = arith.constant 0 : i32
    %c0_i32_1 = arith.constant 0 : i32
    return %c0_i32, %c0_i32_0 : i32, i32
  }
  func.func @transform_3(%arg0: i32) -> (i32, i32) {
    %c0_i32 = arith.constant 0 : i32
    %c0_i32_0 = arith.constant 0 : i32
    %c0_i32_1 = arith.constant 0 : i32
    return %c0_i32, %c0_i32_0 : i32, i32
  }
  func.func @transform_4(%arg0: i32) -> (i32, i32) {
    %c0_i32 = arith.constant 0 : i32
    %c0_i32_0 = arith.constant 0 : i32
    %c0_i32_1 = arith.constant 0 : i32
    return %c0_i32, %c0_i32_0 : i32, i32
  }
  func.func @transform_5(%arg0: i32) -> (i32, i32) {
    %c0_i32 = arith.constant 0 : i32
    %c0_i32_0 = arith.constant 0 : i32
    %c0_i32_1 = arith.constant 0 : i32
    return %c0_i32, %c0_i32_0 : i32, i32
  }
  func.func @transform_6(%arg0: i32) -> (i32, i32) {
    %c0_i32 = arith.constant 0 : i32
    %c0_i32_0 = arith.constant 0 : i32
    %c0_i32_1 = arith.constant 0 : i32
    return %c0_i32, %c0_i32_0 : i32, i32
  }
  func.func @transform_7(%arg0: i32) -> (i32, i32) {
    %c0_i32 = arith.constant 0 : i32
    %c0_i32_0 = arith.constant 0 : i32
    return %arg0, %c0_i32 : i32, i32
  }
}

</mosaic_0001>

<bundles_post_ra>
// kernel: _actor_forward_padded.1
= control target key start
LH: loop header
LB: loop body
LE: loop exit
PB: predicated region body
PF: predicated region fallthrough
CT: control target
= control target key end

     0   :  { %vm64_vm0 = vcmask 1043456   ;;  %v607_v3 = vmov 0   ;;  %vm60_vm1 = vcmask 195584   ;;  %s802_s0 = inlined_call_operand.vmem [shape: f32[8,24], index: 0, kind: input, shape index: {}]   ;;  %s803_s1 = inlined_call_operand.vmem [shape: bf16[24,200], index: 1, kind: input, shape index: {}]   ;;  %s804_s2 = inlined_call_operand.vmem [shape: f32[1,200], index: 2, kind: input, shape index: {}]   ;;  %s805_s3 = inlined_call_operand.vmem [shape: bf16[200,150], index: 3, kind: input, shape index: {}]   ;;  %s806_s4 = inlined_call_operand.vmem [shape: f32[1,150], index: 4, kind: input, shape index: {}]   ;;  %s807_s5 = inlined_call_operand.vmem [shape: bf16[150,128], index: 5, kind: input, shape index: {}]   ;;  %s808_s6 = inlined_call_operand.vmem [shape: f32[1,128], index: 6, kind: input, shape index: {}]   ;;  %s809_s7 = inlined_call_operand.hbm [shape: f32[8,128], index: 7, kind: output, shape index: {}]  }
   0x1   :  { %v528_v0 = vld [vmem:[%s803_s1 + $0x4] ss:$8 sps:$4 sm:$0xff]   ;;  %v530_v1 = vld [vmem:[%s803_s1] ss:$8 sps:$4 sm:$0xff]   ;;  %v32_v2 = vld [vmem:[%s803_s1 + $0x10] sm:$0xff]  ;;  %103 = vmatprep.mubr.bf16.mxu0 %v607_v3 }
   0x2   :  { %v28_v4 = vld [vmem:[%s802_s0] sm:$0xff]  ;;  %71 = vmatprep.subr.bf16.mxu0 %v528_v0  ;;  %v483_v5 = vcombine.high %v32_v2, %v32_v2  ;;  %v482_v6 = vcombine.low %v32_v2, %v32_v2  ;;  %v536_v10 = vld [vmem:[%s805_s3 + $0x14] ss:$8 sps:$4 sm:$0xff]   ;;  %v538_v11 = vld [vmem:[%s805_s3 + $0x10] ss:$8 sps:$4 sm:$0xff]  }
   0x3   :  { %v533_v7 = vld [vmem:[%s805_s3 + $0x4] ss:$8 sps:$4 sm:$0xff]   ;;  %72 = vmatpush1.bf16.msra.mxu0 %v530_v1  ;;  %v535_v8 = vld [vmem:[%s805_s3] ss:$8 sps:$4 sm:$0xff]   ;;  %v29_v12 = vpack.c.bf16 %v28_v4, %v28_v4  ;;  %v542_v15 = vld [vmem:[%s805_s3 + $0x34] ss:$8 sps:$4 sm:$0xff]  }
   0x4   :  { %484 = vmatprep.subr.msk.bf16.mxu0 %vm64_vm0, %v483_v5  ;;  %v66_v9 = vsel %vm64_vm0, %v482_v6, 0  ;;  %288 = vmatprep.subr.bf16.mxu1 %v533_v7  ;;  %v539_v13 = vld [vmem:[%s805_s3 + $0x24] ss:$8 sps:$4 sm:$0xff]   ;;  %v541_v14 = vld [vmem:[%s805_s3 + $0x20] ss:$8 sps:$4 sm:$0xff]  }
   0x5   :  { %289 = vmatpush1.bf16.msra.mxu1 %v535_v8  ;;  %v544_v16 = vld [vmem:[%s805_s3 + $0x30] ss:$8 sps:$4 sm:$0xff]   ;;  %v545_v17 = vld [vmem:[%s805_s3 + $0x44] ss:$8 sps:$4 sm:$0xff]   ;;  %v547_v18 = vld [vmem:[%s805_s3 + $0x40] ss:$8 sps:$4 sm:$0xff]  }
   0x6   :  { %290 = vmatprep.subr.bf16.mxu1 %v536_v10  ;;  %v548_v19 = vld [vmem:[%s805_s3 + $0x54] ss:$8 sps:$4 sm:$0xff]   ;;  %v550_v20 = vld [vmem:[%s805_s3 + $0x50] ss:$8 sps:$4 sm:$0xff]   ;;  %v551_v21 = vld [vmem:[%s805_s3 + $0x64] ss:$8 sps:$4 sm:$0xff]  }
   0x7   :  { %74 = vmatpush1.bf16.msra.mxu0 %v66_v9 }
   0x8   :  { %424 = vmatprep.subr.bf16.mxu0 %v607_v3 }
   0x9   :  { %291 = vmatpush1.bf16.msra.mxu1 %v538_v11 }
   0xa   :  { %485 = vmatmul.mubr.msk.bf16.vlgmr.msra.gmra.mrb[0].mxu0 %vm60_vm1, %v29_v12  ;;  %292 = vmatprep.subr.bf16.mxu1 %v539_v13 }
   0xd   :  { %293 = vmatpush1.bf16.msra.mxu1 %v541_v14 }
   0xe   :  { %294 = vmatprep.subr.bf16.mxu1 %v542_v15 }
  0x11   :  { %295 = vmatpush1.bf16.msra.mxu1 %v544_v16 }
  0x12   :  { %296 = vmatprep.subr.bf16.mxu1 %v545_v17 }
  0x15   :  { %297 = vmatpush1.bf16.msra.mxu1 %v547_v18 }
  0x16   :  { %298 = vmatprep.subr.bf16.mxu1 %v548_v19 }
  0x17   :  { %12 = vsyncpa [#allocation3], 0  ;;  %v553_v22 = vld [vmem:[%s805_s3 + $0x60] ss:$8 sps:$4 sm:$0xff]   ;;  %v554_v23 = vld [vmem:[%s805_s3 + $0x74] ss:$8 sps:$4 sm:$0xff]   ;;  %v35_v45 = vlaneseq }
  0x18   :  { %v556_v24 = vld [vmem:[%s805_s3 + $0x70] ss:$8 sps:$4 sm:$0xff]   ;;  %v557_v25 = vld [vmem:[%s805_s3 + $0x84] ss:$8 sps:$4 sm:$0xff]   ;;  %v559_v26 = vld [vmem:[%s805_s3 + $0x80] ss:$8 sps:$4 sm:$0xff]  }
  0x19   :  { %299 = vmatpush1.bf16.msra.mxu1 %v550_v20  ;;  %v560_v27 = vld [vmem:[%s805_s3 + $0x94] ss:$8 sps:$4 sm:$0xff]   ;;  %v562_v28 = vld [vmem:[%s805_s3 + $0x90] ss:$8 sps:$4 sm:$0xff]   ;;  %v563_v29 = vld [vmem:[%s805_s3 + $0xa4] ss:$8 sps:$4 sm:$0xff]  }
  0x1a   :  { %300 = vmatprep.subr.bf16.mxu1 %v551_v21  ;;  %v565_v30 = vld [vmem:[%s805_s3 + $0xa0] ss:$8 sps:$4 sm:$0xff]   ;;  %v566_v31 = vld [vmem:[%s805_s3 + $0xb4] ss:$8 sps:$4 sm:$0xff]   ;;  %v568_v32 = vld [vmem:[%s805_s3 + $0xb0] ss:$8 sps:$4 sm:$0xff]  }
  0x1b   :  { %v140_v33 = vld [vmem:[%s805_s3 + $0xc0] sm:$0xff]  ;;  %v572_v38 = vld [vmem:[%s807_s5 + $0x8] sm:$0xff]   ;;  %v573_v39 = vld [vmem:[%s807_s5 + $0x10] sm:$0xff]   ;;  %v36_v46 = vshrl.u32 %v35_v45, 7  ;;  %vm278_vm2 = vcmask 588800   ;;  %vm420_vm3 = vcmask 1042432  }
  0x1c   :  { %v511_v34 = vcombine.high %v140_v33, %v140_v33  ;;  %v510_v35 = vcombine.low %v140_v33, %v140_v33  ;;  %v571_v37 = vld [vmem:[%s807_s5] sm:$0xff]   ;;  %v574_v40 = vld [vmem:[%s807_s5 + $0x18] sm:$0xff]   ;;  %v576_v42 = vld [vmem:[%s807_s5 + $0x28] sm:$0xff]   ;;  %vm416_vm4 = vcmask 179200  }
  0x1d   :  { %301 = vmatpush1.bf16.msra.mxu1 %v553_v22  ;;  %425 = vmatpush1.bf16.msra.mxu0 %v571_v37  ;;  %v575_v41 = vld [vmem:[%s807_s5 + $0x20] sm:$0xff]   ;;  %v577_v43 = vld [vmem:[%s807_s5 + $0x30] sm:$0xff]   ;;  %v578_v44 = vld [vmem:[%s807_s5 + $0x38] sm:$0xff]   ;;  %v37_v47 = vsub.s32 0, %v36_v46  ;;  %v41_v49 = vsub.s32 1, %v36_v46 }
  0x1e   :  { %302 = vmatprep.subr.bf16.mxu1 %v554_v23  ;;  %v283_v36 = vsel %vm64_vm0, %v510_v35, 0  ;;  %426 = vmatprep.subr.bf16.mxu0 %v607_v3  ;;  %v33_v48 = vld [vmem:[%s804_s2] sm:$0x3]  ;;  %v580_v63 = vld [vmem:[%s807_s5 + $0x48] ss:$0 sps:$4 sm:$0x77]  }
  0x1f   :  { %v38_v50 = vrot.slane %v33_v48, %v37_v47  ;;  %v42_v51 = vrot.slane %v33_v48, %v41_v49  ;;  %v579_v62 = vld [vmem:[%s807_s5 + $0x40] sm:$0xff]   ;;  %v422_v0 = vsel %vm420_vm3, %v580_v63, 0 }
  0x20   :  { %v141_v1 = vld [vmem:[%s806_s4] sm:$0x3]  ;;  %s608_s4 = smov [#allocation2]  }
  0x21   :  { %303 = vmatpush1.bf16.msra.mxu1 %v556_v24  ;;  %427 = vmatpush1.bf16.msra.mxu0 %v572_v38  ;;  %v146_v2 = vrot.slane %v141_v1, %v37_v47  ;;  %v150_v4 = vrot.slane %v141_v1, %v41_v49  ;;  %v514_v14 = vld [vmem:[%s808_s6] ss:$0 sm:$0xff]  ;;  %s472_s30 = sshll.u32 %s608_s4, 4  ;;  %s473_s30 = int_to_ptr.vmem [resolvable:$true] %s472_s30 }
  0x22   :  { %304 = vmatprep.subr.bf16.mxu1 %v557_v25  ;;  %428 = vmatprep.subr.bf16.mxu0 %v607_v3  ;;  %s583_s8 = scalar_lea.vmem %s473_s30, 128  ;;  %p588_p1 = scmp.lt.s32.totalorder %s473_s30, %s473_s30 }
  0x23   :  { %p584_p0 = scmp.ne.s32.totalorder %s473_s30, %s583_s8  ;;  %p589_p2 = scmp.lt.s32.totalorder %s583_s8, %s583_s8 }
  0x25   :  { %305 = vmatpush1.bf16.msra.mxu1 %v559_v26  ;;  %429 = vmatpush1.bf16.msra.mxu0 %v573_v39  ;;  %p590_p3 = por %p589_p2, %p588_p1 }
  0x26   :  { %306 = vmatprep.subr.bf16.mxu1 %v560_v27  ;;  %430 = vmatprep.subr.bf16.mxu0 %v607_v3 }
  0x27   :  { %p591_p4 = pnand %p590_p3, %p584_p0 }
  0x29   :  { %307 = vmatpush1.bf16.msra.mxu1 %v562_v28  ;;  %431 = vmatpush1.bf16.msra.mxu0 %v574_v40 }
  0x2a   :  { %308 = vmatprep.subr.bf16.mxu1 %v563_v29  ;;  %432 = vmatprep.subr.bf16.mxu0 %v607_v3 }
  0x2d   :  { %309 = vmatpush1.bf16.msra.mxu1 %v565_v30  ;;  %433 = vmatpush1.bf16.msra.mxu0 %v575_v41 }
  0x2e   :  { %310 = vmatprep.subr.bf16.mxu1 %v566_v31  ;;  %434 = vmatprep.subr.bf16.mxu0 %v607_v3 }
  0x31   :  { %311 = vmatpush1.bf16.msra.mxu1 %v568_v32  ;;  %435 = vmatpush1.bf16.msra.mxu0 %v576_v42 }
  0x32   :  { %512 = vmatprep.subr.msk.bf16.mxu1 %vm64_vm0, %v511_v34  ;;  %436 = vmatprep.subr.bf16.mxu0 %v607_v3 }
  0x35   :  { %313 = vmatpush1.bf16.msra.mxu1 %v283_v36  ;;  %437 = vmatpush1.bf16.msra.mxu0 %v577_v43 }
  0x36   :  { %438 = vmatprep.subr.bf16.mxu0 %v607_v3 }
  0x39   :  { %439 = vmatpush1.bf16.msra.mxu0 %v578_v44 }
  0x3a   :  { %440 = vmatprep.subr.bf16.mxu0 %v607_v3 }
  0x3d   :  { %441 = vmatpush1.bf16.msra.mxu0 %v579_v62 }
  0x3e   :  { %442 = vmatprep.subr.bf16.mxu0 %v607_v3 }
  0x41   :  { %443 = vmatpush1.bf16.msra.mxu0 %v422_v0 }
  0xdd   :  { %v105_v52 = vpop.f32.mrb[0].mxu0 }
  0xde   :  { %v106_v53 = vadd.f32 %v105_v52, %v38_v50  ;;  %v107_v54 = vpop.f32.mrb[1].mxu0 }
  0xdf   :  { %v108_v55 = vadd.f32 %v107_v54, %v42_v51  ;;  %v109_v56 = vpop.f32.mrb[2].mxu0 }
  0xe0   :  { %v112_v57 = vmax.f32 %v106_v53, 0.0  ;;  %v110_v58 = vpop.f32.mrb[3].mxu0 }
  0xe1   :  { %v113_v59 = vmax.f32 %v108_v55, 0.0 }
  0xe2   :  { %v114_v61 = vpack.c.bf16 %v112_v57, %v112_v57 }
  0xe3   :  { %v115_v60 = vpack.c.bf16 %v113_v59, %v113_v59 }
  0xe5   :  { %513 = vmatprep.mubr.msk.bf16.mxu1 %vm278_vm2, %v115_v60 }
  0xe6   :  { %321 = vmatmul.mubr.bf16.vlgmr.msra.gmra.mrb[0].mxu1 %v114_v61 }
 0x1b9   :  { %v322_v5 = vpop.f32.mrb[0].mxu1 }
 0x1ba   :  { %v323_v6 = vadd.f32 %v322_v5, %v146_v2  ;;  %v324_v7 = vpop.f32.mrb[1].mxu1 }
 0x1bb   :  { %v325_v8 = vadd.f32 %v324_v7, %v150_v4  ;;  %v326_v9 = vpop.f32.mrb[2].mxu1 }
 0x1bc   :  { %v329_v10 = vmax.f32 %v323_v6, 0.0  ;;  %v327_v3 = vpop.f32.mrb[3].mxu1 }
 0x1bd   :  { %v330_v11 = vmax.f32 %v325_v8, 0.0 }
 0x1be   :  { %v331_v13 = vpack.c.bf16 %v329_v10, %v329_v10 }
 0x1bf   :  { %v332_v12 = vpack.c.bf16 %v330_v11, %v330_v11 }
 0x1c1   :  { %525 = vmatprep.mubr.msk.bf16.mxu0 %vm416_vm4, %v332_v12 }
 0x1c2   :  { %457 = vmatmul.mubr.bf16.vlgmr.msra.gmra.mrb[4].mxu0 %v331_v13 }
 0x295   :  { %v458_v15 = vpop.f32.mrb[4].mxu0 }
 0x296   :  { %v459_v16 = vadd.f32 %v514_v14, %v458_v15  ;;  %v460_v17 = vpop.f32.mrb[5].mxu0 }
 0x297   :  { %v461_v18 = vpop.f32.mrb[6].mxu0 }
 0x298   :  { %581 = vtanh.f32 %v459_v16  ;;  %v462_v19 = vpop.f32.mrb[7].mxu0 }
 0x2a2   :  { %v582_v20 = vpop.eup %581 }
 0x2a3   :  { %465 = vst [vmem:[#allocation2] sm:$0xff] %v582_v20 }
 0x2a4   :  { %594 = shalt.err (!%p591_p4)
}
 0x2a5   :  { %s595_s10 = scalar_lea.hbm %s809_s7, 128 }
 0x2a6   :  { %p596_p5 = scmp.ne.s32.totalorder %s809_s7, %s595_s10  ;;  %p599_p6 = scmp.lt.u32.totalorder %s595_s10, %s809_s7 }
 0x2a8   :  { %p601_p7 = pnand %p599_p6, %p596_p5 }
 0x2aa   :  { %604 = shalt.err (!%p601_p7)
}
 0x2ab   :  { %475 = dma.vmem_to_hbm [thread:$0]  %s473_s30, 128, %s809_s7, [#allocation3]  }
 0x2ac   :  { %605 = dma.done.wait [#allocation3], 128  }
 0x2ad   :  { %606 = vsyncadd [#allocation3], 4294967168 }
 0x2ae   :  { %479 = vsyncpa [#allocation3], 1 }

</bundles_post_ra>
